<compile_context>
chip_gen: v5e
topology: v5e:2x2
jax: 0.10.0
libtpu: 0.0.40
codegen_flags: <defaults>
</compile_context>

<pallas_src>
import functools

import jax
import jax.numpy as jnp
from jax.experimental import pallas as pl
from jax.experimental.pallas import tpu as pltpu

SIGMA_MIN = -5.0
SIGMA_MAX = 2.0


def _round_up(x, m):
    return (x + m - 1) // m * m


def _feature_pad(width):
    # 128-align only when the widest layer is already >= 128; otherwise 16-align
    # (bf16 sublane packing) to avoid blowing up zero-padding for small MLPs.
    return _round_up(width, 128) if width >= 128 else _round_up(width, 16)


def _actor_kernel(n_hidden, obs_cols, action_dim,
                  x_ref, wh_ref, bh_ref, wo_ref, bo_ref, out_ref):
    """Fused MLP -> single lane-dense [mu | sigma | pad] store.

    x_ref  : (TM, obs_cols)      bf16  obs rows at natural (16-aligned) width
    wh_ref : (L-1, D, D)         bf16  zero-padded hidden weight stack (resident)
    bh_ref : (L-1, D)            f32   zero-padded hidden bias stack   (resident)
    wo_ref : (D, N_OUT)          bf16  zero-padded head weight         (resident)
    bo_ref : (1, N_OUT)          f32   zero-padded head bias           (resident)
    out_ref: (TM, N_OUT)         f32   lanes [0:A) = mu, [A:2A) = sigma, rest pad
    """
    h = x_ref[...]                                   # bf16, fed straight to MXU
    cols = obs_cols
    for li in range(n_hidden):                       # static unroll (tiny L)
        w = wh_ref[li, :cols, :]                     # (cols, D) bf16
        b = bh_ref[li:li + 1, :]                     # (1, D) f32, broadcasts
        h = jnp.dot(h.astype(w.dtype), w, preferred_element_type=jnp.float32) + b
        h = jnp.maximum(h, 0.0)                      # ReLU in f32 (VPU)
        cols = wh_ref.shape[2]                       # full D after first layer
    w_head = wo_ref[:cols, :]                        # (cols, N_OUT) bf16
    y = jnp.dot(h.astype(w_head.dtype), w_head,
                preferred_element_type=jnp.float32) + bo_ref[...]
    # Merge [mu | sigma] in-register: lane < A keeps mu, lane >= A gets
    # exp(clip(.)) (the exp on discarded lanes rides the otherwise-idle EUP slot).
    lane = jax.lax.broadcasted_iota(jnp.int32, y.shape, 1)
    merged = jnp.where(lane < action_dim, y,
                       jnp.exp(jnp.clip(y, SIGMA_MIN, SIGMA_MAX)))
    out_ref[...] = merged.astype(out_ref.dtype)      # one lane-dense store


def pack_params(params, obs_cols, param_dtype=jnp.bfloat16):
    """Pack hidden layers into one zero-padded stack and the head separately.

    W is stored (in, out), i.e. y = x @ W + b == x @ W_pt.T + b.  Zero padding is
    exact: padded input rows hit zero weights, padded output columns get zero
    weights + zero bias, and ReLU(0) == 0, so padded lanes stay zero.
    """
    *hidden_ps, (w_out, b_out) = params
    widths = [obs_cols] + [w.shape[1] for (w, _) in hidden_ps]
    D = _feature_pad(max(widths))
    L = len(hidden_ps)
    wh = jnp.zeros((L, D, D), dtype=param_dtype)
    bh = jnp.zeros((L, D), dtype=jnp.float32)
    for li, (w, b) in enumerate(hidden_ps):
        di, do = w.shape
        wh = wh.at[li, :di, :do].set(w.astype(param_dtype))
        bh = bh.at[li, :do].set(b.astype(jnp.float32))
    di, two_a = w_out.shape
    n_out = max(128, _round_up(two_a, 128))          # lane-dense output width
    wo = jnp.zeros((D, n_out), dtype=param_dtype).at[:di, :two_a].set(
        w_out.astype(param_dtype))
    bo = jnp.zeros((1, n_out), dtype=jnp.float32).at[0, :two_a].set(
        b_out.astype(jnp.float32))
    return wh, bh, wo, bo, D, n_out


def actor_forward(obs, params, action_dim, *, param_dtype=jnp.bfloat16,
                  block_rows=1024, min_grid_steps=2):
    """params: list of (W, b) with W shaped (in, out), b shaped (out,)."""
    n_hidden = len(params) - 1
    assert n_hidden >= 1, "Actor is expected to have at least one hidden layer"
    B, obs_dim = obs.shape
    obs_cols = _round_up(obs_dim, 16)                # 16-aligned feature width
    wh, bh, wo, bo, D, n_out = pack_params(params, obs_cols, param_dtype)

    # Batch tiling: big tiles to amortize per-step overhead, but keep >= 2 grid
    # steps when the batch allows it so "parallel" can split across v7x's 2 TCs.
    b_pad = _round_up(B, 16)
    tm = min(block_rows, b_pad)
    if b_pad // tm < min_grid_steps and b_pad >= min_grid_steps * 16:
        tm = _round_up((b_pad + min_grid_steps - 1) // min_grid_steps, 16)
    b_pad = _round_up(b_pad, tm)

    # obs goes in as bf16 at its natural feature width; pad only if needed.
    x = obs.astype(param_dtype)
    if b_pad != B or obs_cols != obs_dim:
        x = jnp.zeros((b_pad, obs_cols), param_dtype).at[:B, :obs_dim].set(x)

    out = pl.pallas_call(
        functools.partial(_actor_kernel, n_hidden, obs_cols, action_dim),
        out_shape=jax.ShapeDtypeStruct((b_pad, n_out), jnp.float32),
        grid=(b_pad // tm,),
        in_specs=[
            pl.BlockSpec((tm, obs_cols), lambda i: (i, 0)),         # obs (pipelined)
            pl.BlockSpec((n_hidden, D, D), lambda i: (0, 0, 0)),    # hidden W (resident)
            pl.BlockSpec((n_hidden, D), lambda i: (0, 0)),          # hidden b (resident)
            pl.BlockSpec((D, n_out), lambda i: (0, 0)),             # head W   (resident)
            pl.BlockSpec((1, n_out), lambda i: (0, 0)),             # head b   (resident)
        ],
        out_specs=pl.BlockSpec((tm, n_out), lambda i: (i, 0)),
        compiler_params=pltpu.CompilerParams(
            dimension_semantics=("parallel",),   # shard batch axis across TCs (v7x)
        ),
    )(x, wh, bh, wo, bo)

    mu = out[:B, :action_dim]
    sigma = out[:B, action_dim:2 * action_dim]
    return mu, sigma


def _reference_forward(obs, params, action_dim, param_dtype=jnp.bfloat16):
    """Pure-JAX reference mirroring the kernel's bf16-weight / f32-accumulate math."""
    x = obs.astype(jnp.float32)
    for i, (w, b) in enumerate(params):
        wq = w.astype(param_dtype).astype(jnp.float32)
        xq = x.astype(param_dtype).astype(jnp.float32)
        x = jnp.dot(xq, wq, precision=jax.lax.Precision.HIGHEST) + b.astype(jnp.float32)
        if i < len(params) - 1:
            x = jnp.maximum(x, 0.0)
    mu = x[:, :action_dim]
    sigma = jnp.exp(jnp.clip(x[:, action_dim:], SIGMA_MIN, SIGMA_MAX))
    return mu, sigma


def init_params(key, obs_dim, action_dim, hidden_dims):
    neurons = [obs_dim, *hidden_dims, 2 * action_dim]
    params = []
    for l1, l2 in zip(neurons[:-1], neurons[1:]):
        key, kw, kb = jax.random.split(key, 3)
        # deterministic synthetic init (uniform, fan-in scaled, like nn.Linear's range)
        bound = 1.0 / jnp.sqrt(jnp.float32(l1))
        w = jax.random.uniform(kw, (l1, l2), jnp.float32, -bound, bound)
        b = jax.random.uniform(kb, (l2,), jnp.float32, -bound, bound)
        params.append((w, b))
    return params


if __name__ == "__main__":
    B, obs_dim, action_dim = 8, 32, 8
    hidden_dims = (64, 64)

    key = jax.random.PRNGKey(0)
    key, kobs = jax.random.split(key)
    obs = jax.random.normal(kobs, (B, obs_dim), jnp.float32)
    params = init_params(key, obs_dim, action_dim, hidden_dims)

    mu, sigma = actor_forward(obs, params, action_dim)
    mu, sigma = jax.block_until_ready((mu, sigma))

    mu_ref, sigma_ref = _reference_forward(obs, params, action_dim)
    assert mu.shape == (B, action_dim) and sigma.shape == (B, action_dim)
    assert jnp.allclose(mu, mu_ref, atol=2e-3, rtol=2e-3)
    assert jnp.allclose(sigma, sigma_ref, atol=2e-3, rtol=2e-3)
    assert bool(jnp.all(sigma > 0.0))

    # TODO(synk): TanhNormalWrapper (rsample/log_prob/mode/arctanh) is a
    # distribution object built from (mu, sigma); it is not part of the forward
    # hot path and is left to ordinary JAX code outside the kernel.
    print("KERNEL_OK")
</pallas_src>

<mosaic_0001>
module attributes {stable_mosaic.version = 11 : i64} {
  func.func @_actor_kernel(%arg0: i32, %arg1: memref<16x32xbf16, #tpu.memory_space<vmem>>, %arg2: memref<2x64x64xbf16, #tpu.memory_space<vmem>>, %arg3: memref<2x64xf32, #tpu.memory_space<vmem>>, %arg4: memref<64x128xbf16, #tpu.memory_space<vmem>>, %arg5: memref<1x128xf32, #tpu.memory_space<vmem>>, %arg6: memref<16x128xf32, #tpu.memory_space<vmem>>) attributes {dimension_semantics = [#tpu.dimension_semantics<parallel>], iteration_bounds = array<i64: 1>, scalar_prefetch = 0 : i64, scratch_operands = 0 : i64, tpu.core_type = #tpu.core_type<tc>, window_params = [{transform_indices = @transform_0, window_bounds = array<i64: 16, 32>}, {pipeline_mode = #tpu.pipeline_mode<synchronous>, transform_indices = @transform_1, window_bounds = array<i64: 2, 64, 64>}, {pipeline_mode = #tpu.pipeline_mode<synchronous>, transform_indices = @transform_2, window_bounds = array<i64: 2, 64>}, {pipeline_mode = #tpu.pipeline_mode<synchronous>, transform_indices = @transform_3, window_bounds = array<i64: 64, 128>}, {pipeline_mode = #tpu.pipeline_mode<synchronous>, transform_indices = @transform_4, window_bounds = array<i64: 1, 128>}, {transform_indices = @transform_5, window_bounds = array<i64: 16, 128>}]} {
    %c0 = arith.constant 0 : index
    %c0_0 = arith.constant 0 : index
    %0 = vector.load %arg1[%c0, %c0_0] : memref<16x32xbf16, #tpu.memory_space<vmem>>, vector<16x32xbf16>
    %c0_1 = arith.constant 0 : index
    %c0_2 = arith.constant 0 : index
    %c0_3 = arith.constant 0 : index
    %1 = vector.load %arg2[%c0_1, %c0_2, %c0_3] : memref<2x64x64xbf16, #tpu.memory_space<vmem>>, vector<1x32x64xbf16>
    %2 = vector.shape_cast %1 : vector<1x32x64xbf16> to vector<32x64xbf16>
    %c0_4 = arith.constant 0 : index
    %c0_5 = arith.constant 0 : index
    %3 = vector.load %arg3[%c0_4, %c0_5] : memref<2x64xf32, #tpu.memory_space<vmem>>, vector<1x64xf32>
    %cst = arith.constant dense<0.000000e+00> : vector<16x64xf32>
    %4 = tpu.matmul %0, %2, %cst {dimension_numbers = #tpu.dot_dimension_numbers<[1], [0], [0], [1], [0, 0, 1, 1], [], []>} : vector<16x32xbf16>, vector<32x64xbf16>, vector<16x64xf32> -> vector<16x64xf32>
    %5 = vector.broadcast %3 : vector<1x64xf32> to vector<16x64xf32>
    %6 = arith.addf %4, %5 : vector<16x64xf32>
    %cst_6 = arith.constant 0.000000e+00 : f32
    %7 = vector.broadcast %cst_6 : f32 to vector<16x64xf32>
    %8 = arith.maximumf %6, %7 : vector<16x64xf32>
    %c1 = arith.constant 1 : index
    %c0_7 = arith.constant 0 : index
    %c0_8 = arith.constant 0 : index
    %9 = vector.load %arg2[%c1, %c0_7, %c0_8] : memref<2x64x64xbf16, #tpu.memory_space<vmem>>, vector<1x64x64xbf16>
    %10 = vector.shape_cast %9 : vector<1x64x64xbf16> to vector<64x64xbf16>
    %c1_9 = arith.constant 1 : index
    %c0_10 = arith.constant 0 : index
    %11 = vector.load %arg3[%c1_9, %c0_10] : memref<2x64xf32, #tpu.memory_space<vmem>>, vector<1x64xf32>
    %12 = arith.truncf %8 : vector<16x64xf32> to vector<16x64xbf16>
    %cst_11 = arith.constant dense<0.000000e+00> : vector<16x64xf32>
    %13 = tpu.matmul %12, %10, %cst_11 {dimension_numbers = #tpu.dot_dimension_numbers<[1], [0], [0], [1], [0, 0, 1, 1], [], []>} : vector<16x64xbf16>, vector<64x64xbf16>, vector<16x64xf32> -> vector<16x64xf32>
    %14 = vector.broadcast %11 : vector<1x64xf32> to vector<16x64xf32>
    %15 = arith.addf %13, %14 : vector<16x64xf32>
    %cst_12 = arith.constant 0.000000e+00 : f32
    %16 = vector.broadcast %cst_12 : f32 to vector<16x64xf32>
    %17 = arith.maximumf %15, %16 : vector<16x64xf32>
    %c0_13 = arith.constant 0 : index
    %c0_14 = arith.constant 0 : index
    %18 = vector.load %arg4[%c0_13, %c0_14] : memref<64x128xbf16, #tpu.memory_space<vmem>>, vector<64x128xbf16>
    %19 = arith.truncf %17 : vector<16x64xf32> to vector<16x64xbf16>
    %cst_15 = arith.constant dense<0.000000e+00> : vector<16x128xf32>
    %20 = tpu.matmul %19, %18, %cst_15 {dimension_numbers = #tpu.dot_dimension_numbers<[1], [0], [0], [1], [0, 0, 1, 1], [], []>} : vector<16x64xbf16>, vector<64x128xbf16>, vector<16x128xf32> -> vector<16x128xf32>
    %c0_16 = arith.constant 0 : index
    %c0_17 = arith.constant 0 : index
    %21 = vector.load %arg5[%c0_16, %c0_17] : memref<1x128xf32, #tpu.memory_space<vmem>>, vector<1x128xf32>
    %22 = vector.broadcast %21 : vector<1x128xf32> to vector<16x128xf32>
    %23 = arith.addf %20, %22 : vector<16x128xf32>
    %24 = tpu.iota {dimensions = array<i32: 1>} : vector<16x128xi32>
    %c8_i32 = arith.constant 8 : i32
    %25 = vector.broadcast %c8_i32 : i32 to vector<16x128xi32>
    %26 = arith.cmpi slt, %24, %25 : vector<16x128xi32>
    %cst_18 = arith.constant -5.000000e+00 : f32
    %cst_19 = arith.constant 2.000000e+00 : f32
    %27 = vector.broadcast %cst_18 : f32 to vector<16x128xf32>
    %28 = arith.maximumf %27, %23 : vector<16x128xf32>
    %29 = vector.broadcast %cst_19 : f32 to vector<16x128xf32>
    %30 = arith.minimumf %29, %28 : vector<16x128xf32>
    %31 = math.exp %30 : vector<16x128xf32>
    %32 = arith.select %26, %23, %31 : vector<16x128xi1>, vector<16x128xf32>
    %c0_20 = arith.constant 0 : index
    %c0_21 = arith.constant 0 : index
    %33 = vector.load %arg6[%c0_20, %c0_21] : memref<16x128xf32, #tpu.memory_space<vmem>>, vector<16x128xf32>
    tpu.vector_store %arg6[%c0_20, %c0_21], %32 {strides = array<i32>} : memref<16x128xf32, #tpu.memory_space<vmem>>, vector<16x128xf32>,
    return
  }
  func.func @transform_0(%arg0: i32) -> (i32, i32) {
    %c0_i32 = arith.constant 0 : i32
    %c0_i32_0 = arith.constant 0 : i32
    return %arg0, %c0_i32 : i32, i32
  }
  func.func @transform_1(%arg0: i32) -> (i32, i32, i32) {
    %c0_i32 = arith.constant 0 : i32
    %c0_i32_0 = arith.constant 0 : i32
    %c0_i32_1 = arith.constant 0 : i32
    %c0_i32_2 = arith.constant 0 : i32
    return %c0_i32, %c0_i32_0, %c0_i32_1 : i32, i32, i32
  }
  func.func @transform_2(%arg0: i32) -> (i32, i32) {
    %c0_i32 = arith.constant 0 : i32
    %c0_i32_0 = arith.constant 0 : i32
    %c0_i32_1 = arith.constant 0 : i32
    return %c0_i32, %c0_i32_0 : i32, i32
  }
  func.func @transform_3(%arg0: i32) -> (i32, i32) {
    %c0_i32 = arith.constant 0 : i32
    %c0_i32_0 = arith.constant 0 : i32
    %c0_i32_1 = arith.constant 0 : i32
    return %c0_i32, %c0_i32_0 : i32, i32
  }
  func.func @transform_4(%arg0: i32) -> (i32, i32) {
    %c0_i32 = arith.constant 0 : i32
    %c0_i32_0 = arith.constant 0 : i32
    %c0_i32_1 = arith.constant 0 : i32
    return %c0_i32, %c0_i32_0 : i32, i32
  }
  func.func @transform_5(%arg0: i32) -> (i32, i32) {
    %c0_i32 = arith.constant 0 : i32
    %c0_i32_0 = arith.constant 0 : i32
    return %arg0, %c0_i32 : i32, i32
  }
}

</mosaic_0001>

<bundles_post_ra>
// kernel: tpu_custom_call.1
= control target key start
LH: loop header
LB: loop body
LE: loop exit
PB: predicated region body
PF: predicated region fallthrough
CT: control target
= control target key end

     0   :  { %10 = vsyncpa [#allocation3], 0  ;;  %s535_s0 = inlined_call_operand.hbm [shape: bf16[16,32], index: 0, kind: input, shape index: {}]   ;;  %s536_s1 = inlined_call_operand.hbm [shape: bf16[2,64,64], index: 1, kind: input, shape index: {}]   ;;  %s537_s2 = inlined_call_operand.hbm [shape: f32[2,64], index: 2, kind: input, shape index: {}]   ;;  %s538_s3 = inlined_call_operand.hbm [shape: bf16[64,128], index: 3, kind: input, shape index: {}]   ;;  %s539_s4 = inlined_call_operand.vmem [shape: f32[1,128], index: 4, kind: input, shape index: {}]   ;;  %s540_s5 = inlined_call_operand.hbm [shape: f32[16,128], index: 5, kind: output, shape index: {}]  }
   0x1   :  { %11 = vsyncpa [#allocation6], 0 }
   0x2   :  { %12 = vsyncpa [#allocation9], 0 }
   0x3   :  { %13 = vsyncpa [#allocation4], 0  ;;  %s31_s20 = sshll.u32 %s536_s1, 4  ;;  %s476_s21 = smov [#allocation5]   ;;  %s32_s20 = int_to_ptr.hbm [resolvable:$true] %s31_s20 }
   0x4   :  { %s33_s22 = sshll.u32 %s476_s21, 4  ;;  %s18_s25 = sshll.u32 %s535_s0, 4  ;;  %s34_s22 = int_to_ptr.vmem [resolvable:$true] %s33_s22  ;;  %s19_s25 = int_to_ptr.hbm [resolvable:$true] %s18_s25 }
   0x5   :  { %s477_s26 = smov 64   ;;  %s478_s27 = smov 4  }
   0x6   :  { %39 = dma.hbm_to_vmem [thread:$0]  %s32_s20, 1024, %s34_s22, [#allocation6], %s477_s26, %s477_s26, %s478_s27  }
   0x7   :  { %s479_s28 = smov [#allocation2]   ;;  %s45_s7 = sshll.u32 %s537_s2, 4  ;;  %s46_s7 = int_to_ptr.hbm [resolvable:$true] %s45_s7 }
   0x8   :  { %s20_s29 = sshll.u32 %s479_s28, 4  ;;  %s55_s9 = sshll.u32 %s538_s3, 4  ;;  %s21_s29 = int_to_ptr.vmem [resolvable:$true] %s20_s29  ;;  %s56_s9 = int_to_ptr.hbm [resolvable:$true] %s55_s9 }
   0x9   :  { %26 = dma.hbm_to_vmem [thread:$0]  %s19_s25, 128, %s21_s29, [#allocation3], %s477_s26, %s477_s26, %s478_s27  }
   0xa   :  { %s480_s10 = smov [#allocation7]   ;;  %s481_s0 = smov [#allocation8]  }
   0xb   :  { %s47_s11 = sshll.u32 %s480_s10, 4  ;;  %s57_s12 = sshll.u32 %s481_s0, 4  ;;  %s48_s11 = int_to_ptr.vmem [resolvable:$true] %s47_s11  ;;  %s58_s12 = int_to_ptr.vmem [resolvable:$true] %s57_s12 }
   0xc   :  { %50 = dma.hbm_to_vmem [thread:$0]  %s46_s7, 32, %s48_s11, [#allocation6]  }
   0xd   :  { %63 = dma.hbm_to_vmem [thread:$0]  %s56_s9, 512, %s58_s12, [#allocation9], %s477_s26, %s477_s26, %s478_s27  }
   0xe   :  { %468 = dma.done.wait [#allocation3], 128  }
   0xf   :  { %469 = vsyncadd [#allocation3], 4294967168 }
  0x10   :  { %470 = dma.done.wait [#allocation6], 1056  }
  0x11   :  { %471 = vsyncadd [#allocation6], 4294966240 }
  0x12   :  { %472 = dma.done.wait [#allocation9], 512  }
  0x13   :  { %473 = vsyncadd [#allocation9], 4294966784  ;;  %v323_v0 = vld [vmem:[#allocation5 + $0x8] sm:$0xff]  ;;  %v322_v1 = vld [vmem:[#allocation5] sm:$0xff]  ;;  %vm108_vm0 = vcmask 261120   ;;  %vm164_vm1 = vcmask 523264   ;;  %v238_v31 = vlaneseq }
  0x14   :  { %118 = vmatpush.bf16.msra.mxu0 %v323_v0  ;;  %v321_v2 = vld [vmem:[#allocation2] sm:$0xff]  ;;  %v326_v4 = vld [vmem:[#allocation5 + $0x30] sm:$0xff]  ;;  %v325_v5 = vld [vmem:[#allocation5 + $0x28] sm:$0xff]  ;;  %s482_s13 = smov [#allocation10]   ;;  %s259_s16 = sshll.u32 %s540_s5, 4  ;;  %s260_s16 = int_to_ptr.hbm [resolvable:$true] %s259_s16 }
  0x15   :  { %v327_v3 = vld [vmem:[#allocation5 + $0x38] sm:$0xff]  ;;  %v324_v6 = vld [vmem:[#allocation5 + $0x20] sm:$0xff]  ;;  %v329_v17 = vld [vmem:[#allocation8 + $0x8] sm:$0xff]  ;;  %v239_v35 = vand.u32 127, %v238_v31  ;;  %s483_s17 = smov 128   ;;  %s484_s18 = smov 8  }
  0x16   :  { %172 = vmatpush.bf16.msra.mxu1 %v327_v3  ;;  %v341_v8 = vld [vmem:[#allocation7] ss:$0 sm:$0xff]  ;;  %v330_v16 = vld [vmem:[#allocation8 + $0x10] sm:$0xff]  ;;  %v328_v18 = vld [vmem:[#allocation8] sm:$0xff] }
  0x17   :  { %v331_v15 = vld [vmem:[#allocation8 + $0x18] sm:$0xff]  ;;  %v343_v27 = vld [vmem:[%s539_s4] ss:$0 sm:$0xff]  ;;  %vm240_vm2 = vcmp.lt.s32.totalorder %v239_v35, 8  ;;  %s257_s4 = sshll.u32 %s482_s13, 4  ;;  %s258_s4 = int_to_ptr.vmem [resolvable:$true] %s257_s4 }
  0x18   :  { %119 = vmatpush.bf16.msra.mxu0 %v322_v1  ;;  %228 = vmatpush.bf16.msra.mxu2 %v331_v15  ;;  %v342_v20 = vld [vmem:[#allocation7 + $0x1] ss:$0 sm:$0xff] }
  0x1a   :  { %173 = vmatpush.bf16.msra.mxu1 %v326_v4 }
  0x1b   :  { %286 = vmatmul.msk.bf16.vlgmr.msra.gmra.mxu0 %vm108_vm0, %v321_v2 }
  0x1c   :  { %229 = vmatpush.bf16.msra.mxu2 %v330_v16 }
  0x1e   :  { %174 = vmatpush.bf16.msra.mxu1 %v325_v5 }
  0x20   :  { %230 = vmatpush.bf16.msra.mxu2 %v329_v17 }
  0x22   :  { %175 = vmatpush.bf16.msra.mxu1 %v324_v6 }
  0x24   :  { %231 = vmatpush.bf16.msra.mxu2 %v328_v18 }
  0x98   :  { %v121_v7 = vpop.f32.mrf.mxu0 }
  0x99   :  { %v122_v9 = vadd.f32 %v341_v8, %v121_v7 }
  0x9b   :  { %v126_v12 = vmax.f32 %v122_v9, 0.0 }
  0xa0   :  { %v123_v10 = vpop.f32.mrf.mxu0 }
  0xa1   :  { %v124_v11 = vadd.f32 %v341_v8, %v123_v10 }
  0xa3   :  { %v127_v13 = vmax.f32 %v124_v11, 0.0 }
  0xa5   :  { %v138_v14 = vpack.c.bf16 %v127_v13, %v126_v12 }
  0xa7   :  { %303 = vmatmul.msk.bf16.vlgmr.msra.gmra.mxu1 %vm164_vm1, %v138_v14 }
 0x124   :  { %v177_v19 = vpop.f32.mrf.mxu1 }
 0x125   :  { %v178_v21 = vadd.f32 %v342_v20, %v177_v19 }
 0x127   :  { %v182_v24 = vmax.f32 %v178_v21, 0.0 }
 0x12c   :  { %v179_v22 = vpop.f32.mrf.mxu1 }
 0x12d   :  { %v180_v23 = vadd.f32 %v342_v20, %v179_v22 }
 0x12f   :  { %v183_v25 = vmax.f32 %v180_v23, 0.0 }
 0x131   :  { %v192_v26 = vpack.c.bf16 %v183_v25, %v182_v24 }
 0x133   :  { %320 = vmatmul.msk.bf16.vlgmr.msra.gmra.mxu2 %vm164_vm1, %v192_v26 }
 0x1b6   :  { %v233_v28 = vpop.f32.mrf.mxu2 }
 0x1b7   :  { %v234_v29 = vadd.f32 %v343_v27, %v233_v28 }
 0x1b9   :  { %v241_v30 = vmax.f32 %v234_v29, -5.0 }
 0x1bb   :  { %v243_v32 = vmin.f32 %v241_v30, 2.0 }
 0x1bd   :  { %v245_v33 = vmul.f32 1.442695, %v243_v32 }
 0x1be   :  { %v235_v34 = vpop.f32.mrf.mxu2 }
 0x1bf   :  { %344 = vpow2.f32 %v245_v33  ;;  %v236_v36 = vadd.f32 %v343_v27, %v235_v34 }
 0x1c1   :  { %v242_v37 = vmax.f32 %v236_v36, -5.0 }
 0x1c3   :  { %v244_v38 = vmin.f32 %v242_v37, 2.0 }
 0x1c5   :  { %v345_v39 = vpop.eup %344  ;;  %v247_v40 = vmul.f32 1.442695, %v244_v38 }
 0x1c6   :  { %v249_v41 = vsel %vm240_vm2, %v234_v29, %v345_v39 }
 0x1c7   :  { %251 = vst [vmem:[#allocation10] sm:$0xff] %v249_v41  ;;  %346 = vpow2.f32 %v247_v40 }
 0x1cd   :  { %v347_v42 = vpop.eup %346 }
 0x1ce   :  { %v250_v43 = vsel %vm240_vm2, %v236_v36, %v347_v42 }
 0x1cf   :  { %252 = vst [vmem:[#allocation10 + $0x8] sm:$0xff] %v250_v43 }
 0x1d0   :  { %265 = dma.vmem_to_hbm [thread:$0]  %s258_s4, 256, %s260_s16, [#allocation4], %s483_s17, %s483_s17, %s484_s18  }
 0x1d1   :  { %474 = dma.done.wait [#allocation4], 256  }
 0x1d2   :  { %475 = vsyncadd [#allocation4], 4294967040 }
 0x1d3   :  { %270 = vsyncpa [#allocation3], 1 }
 0x1d4   :  { %271 = vsyncpa [#allocation6], 1 }
 0x1d5   :  { %272 = vsyncpa [#allocation9], 1 }
 0x1d6   :  { %273 = vsyncpa [#allocation4], 1 }

</bundles_post_ra>
